<compile_context>
chip_gen: v7x
topology: tpu7x:2x2x1
jax: 0.10.0
libtpu: 0.0.40
codegen_flags: <defaults>
</compile_context>

<pallas_src>
import functools

import jax
import jax.numpy as jnp
from jax.experimental import pallas as pl
from jax.experimental.pallas import tpu as pltpu


def _round_up(x: int, m: int) -> int:
    return ((x + m - 1) // m) * m


def _fused_mlp_kernel(*refs, num_hidden_layers: int):
    """refs = (x_ref, w0, b0, w1, b1, ..., wL, bL, o_ref).

    Applies num_hidden_layers of (bf16 matmul -> f32 bias -> ReLU) followed by
    one final (bf16 matmul -> f32 bias), all on a single row tile kept resident
    in vregs/VMEM.
    """
    x_ref = refs[0]
    o_ref = refs[-1]
    param_refs = refs[1:-1]

    h = x_ref[...]                       # bf16 row tile
    for l in range(num_hidden_layers):
        w_ref = param_refs[2 * l]
        b_ref = param_refs[2 * l + 1]
        h = jnp.dot(h.astype(jnp.bfloat16), w_ref[...],
                    preferred_element_type=jnp.float32)   # bf16 MXU, f32 acc
        h = h + b_ref[...]               # (1, N) f32 bias broadcasts over rows
        h = jnp.maximum(h, 0.0)          # ReLU (Dropout == identity at eval)

    w_ref = param_refs[-2]
    b_ref = param_refs[-1]
    y = jnp.dot(h.astype(jnp.bfloat16), w_ref[...],
                preferred_element_type=jnp.float32) + b_ref[...]
    o_ref[...] = y.astype(o_ref.dtype)   # lane-dense (tm, 128) bf16 store


def prepare_params(params, *, lane_pad: int = 128,
                   compute_dtype=jnp.bfloat16):
    """One-time parameter prep, hoisted out of the forward path.

    * weights -> bf16 [in, out]  (halves HBM reads, 2x MXU rate on v6e/v7x)
    * biases stay f32 (bias + ReLU math kept in f32)
    * last layer zero-padded to a full 128-lane output slab so the kernel's
      only HBM store is an unmasked lane-dense store.
    """
    prepared = []
    last = len(params) - 1
    for i, (w, b) in enumerate(params):
        if i == last:
            n_out = w.shape[1]
            n_pad = _round_up(max(n_out, lane_pad), lane_pad)
            w = jnp.zeros((w.shape[0], n_pad), w.dtype).at[:, :n_out].set(w)
            b = jnp.zeros((1, n_pad), b.dtype).at[:, :n_out].set(b)
        prepared.append((w.astype(compute_dtype), b.astype(jnp.float32)))
    return prepared


def net_forward(prepared_params, x, *, out_dim: int = 2, tm: int = 512):
    """Forward pass of Net (inference mode) using pre-prepared params."""
    M, K = x.shape
    num_layers = len(prepared_params)
    n_pad = prepared_params[-1][0].shape[1]

    x = x.astype(prepared_params[0][0].dtype)   # bf16 input read

    # Row tile: large tiles amortize per-grid-step overhead; ragged last block
    # is handled by Pallas' masked loads/stores (no jnp.pad copy of x).
    # Guarantee >= 2 grid steps when the batch allows it so the "parallel"
    # batch axis can be split across v7x's two TensorCores.
    tm_eff = min(tm, _round_up(M, 8))
    if pl.cdiv(M, tm_eff) < 2 and M > 8:
        tm_eff = max(8, _round_up(pl.cdiv(M, 2), 8))
    grid = (pl.cdiv(M, tm_eff),)

    flat_args = [x]
    in_specs = [pl.BlockSpec((tm_eff, K), lambda i: (i, 0))]   # x row tile
    for w, b in prepared_params:
        flat_args.append(w)
        flat_args.append(b)
        # Tiny weights/biases: whole arrays resident in VMEM, constant index.
        # TODO(synk): for large hidden dims (esp. v7x's 64 MiB VMEM) single-
        # buffer these (pipeline_mode=pl.Buffered(1)) and/or add a K-reduction
        # grid axis with a VMEM f32 accumulator instead of whole-weight loads.
        in_specs.append(pl.BlockSpec(w.shape, lambda i: (0, 0)))
        in_specs.append(pl.BlockSpec(b.shape, lambda i: (0, 0)))

    kernel = functools.partial(_fused_mlp_kernel,
                               num_hidden_layers=num_layers - 1)

    out = pl.pallas_call(
        kernel,
        out_shape=jax.ShapeDtypeStruct((M, n_pad), jnp.bfloat16),
        grid=grid,
        in_specs=in_specs,
        out_specs=pl.BlockSpec((tm_eff, n_pad), lambda i: (i, 0)),
        compiler_params=pltpu.CompilerParams(
            dimension_semantics=("parallel",)),   # v7x: shard batch over 2 TCs
    )(*flat_args)

    # Under jit this slice fuses into the consumer; callers that can consume
    # the padded (M, 128) slab directly should take `out` as-is.
    return out[:, :out_dim]


def init_net_params(key, input_dim, hidden_dim, num_layers):
    """Params matching nn.Linear default init (uniform +-1/sqrt(fan_in)).

    Weights stored as [in, out] (transposed vs. PyTorch's [out, in])."""
    dims = [input_dim] + [hidden_dim] * num_layers + [2]
    params = []
    for i in range(len(dims) - 1):
        fan_in, fan_out = dims[i], dims[i + 1]
        key, kw, kb = jax.random.split(key, 3)
        bound = 1.0 / (fan_in ** 0.5)
        w_t = jax.random.uniform(kw, (fan_in, fan_out), jnp.float32, -bound, bound)
        b = jax.random.uniform(kb, (1, fan_out), jnp.float32, -bound, bound)
        params.append((w_t, b))
    return params


if __name__ == "__main__":
    input_dim = 32
    hidden_dim = 32
    num_layers = 3
    dropout_rate = 0.5  # unused at inference (eval-mode Dropout == identity)
    batch = 8

    key = jax.random.PRNGKey(0)
    key, kx = jax.random.split(key)
    x = jax.random.normal(kx, (batch, input_dim), jnp.float32)

    params = init_net_params(key, input_dim, hidden_dim, num_layers)
    prepared = prepare_params(params)          # one-time: bf16 + lane padding

    fwd = jax.jit(functools.partial(net_forward, out_dim=2))
    out = jax.block_until_ready(fwd(prepared, x))

    # Reference mirroring the kernel math (bf16 matmuls, f32 accumulation).
    ref = x.astype(jnp.bfloat16)
    for w, b in prepared[:-1]:
        ref = jnp.maximum(
            jnp.dot(ref.astype(jnp.bfloat16), w,
                    preferred_element_type=jnp.float32) + b, 0.0)
    w, b = prepared[-1]
    ref = jnp.dot(ref.astype(jnp.bfloat16), w,
                  preferred_element_type=jnp.float32) + b
    ref = ref[:, :2]

    assert out.shape == (batch, 2), out.shape
    err = jnp.max(jnp.abs(out.astype(jnp.float32) - ref))
    assert jnp.allclose(out.astype(jnp.float32), ref, atol=1e-2, rtol=1e-2), err

    print("KERNEL_OK")
</pallas_src>

<mosaic_0001>
module attributes {stable_mosaic.version = 11 : i64} {
  func.func @_fused_mlp_kernel(%arg0: i32, %arg1: memref<8x32xbf16, #tpu.memory_space<vmem>>, %arg2: memref<32x32xbf16, #tpu.memory_space<vmem>>, %arg3: memref<1x32xf32, #tpu.memory_space<vmem>>, %arg4: memref<32x32xbf16, #tpu.memory_space<vmem>>, %arg5: memref<1x32xf32, #tpu.memory_space<vmem>>, %arg6: memref<32x32xbf16, #tpu.memory_space<vmem>>, %arg7: memref<1x32xf32, #tpu.memory_space<vmem>>, %arg8: memref<32x128xbf16, #tpu.memory_space<vmem>>, %arg9: memref<1x128xf32, #tpu.memory_space<vmem>>, %arg10: memref<8x128xbf16, #tpu.memory_space<vmem>>) attributes {dimension_semantics = [#tpu.dimension_semantics<parallel>], iteration_bounds = array<i64: 1>, scalar_prefetch = 0 : i64, scratch_operands = 0 : i64, tpu.core_type = #tpu.core_type<tc>, window_params = [{transform_indices = @transform_0, window_bounds = array<i64: 8, 32>}, {pipeline_mode = #tpu.pipeline_mode<synchronous>, transform_indices = @transform_1, window_bounds = array<i64: 32, 32>}, {pipeline_mode = #tpu.pipeline_mode<synchronous>, transform_indices = @transform_2, window_bounds = array<i64: 1, 32>}, {pipeline_mode = #tpu.pipeline_mode<synchronous>, transform_indices = @transform_3, window_bounds = array<i64: 32, 32>}, {pipeline_mode = #tpu.pipeline_mode<synchronous>, transform_indices = @transform_4, window_bounds = array<i64: 1, 32>}, {pipeline_mode = #tpu.pipeline_mode<synchronous>, transform_indices = @transform_5, window_bounds = array<i64: 32, 32>}, {pipeline_mode = #tpu.pipeline_mode<synchronous>, transform_indices = @transform_6, window_bounds = array<i64: 1, 32>}, {pipeline_mode = #tpu.pipeline_mode<synchronous>, transform_indices = @transform_7, window_bounds = array<i64: 32, 128>}, {pipeline_mode = #tpu.pipeline_mode<synchronous>, transform_indices = @transform_8, window_bounds = array<i64: 1, 128>}, {transform_indices = @transform_9, window_bounds = array<i64: 8, 128>}]} {
    %c0 = arith.constant 0 : index
    %c0_0 = arith.constant 0 : index
    %0 = vector.load %arg1[%c0, %c0_0] : memref<8x32xbf16, #tpu.memory_space<vmem>>, vector<8x32xbf16>
    %c0_1 = arith.constant 0 : index
    %c0_2 = arith.constant 0 : index
    %1 = vector.load %arg2[%c0_1, %c0_2] : memref<32x32xbf16, #tpu.memory_space<vmem>>, vector<32x32xbf16>
    %cst = arith.constant dense<0.000000e+00> : vector<8x32xf32>
    %2 = tpu.matmul %0, %1, %cst {dimension_numbers = #tpu.dot_dimension_numbers<[1], [0], [0], [1], [0, 0, 1, 1], [], []>} : vector<8x32xbf16>, vector<32x32xbf16>, vector<8x32xf32> -> vector<8x32xf32>
    %c0_3 = arith.constant 0 : index
    %c0_4 = arith.constant 0 : index
    %3 = vector.load %arg3[%c0_3, %c0_4] : memref<1x32xf32, #tpu.memory_space<vmem>>, vector<1x32xf32>
    %4 = vector.broadcast %3 : vector<1x32xf32> to vector<8x32xf32>
    %5 = arith.addf %2, %4 : vector<8x32xf32>
    %cst_5 = arith.constant 0.000000e+00 : f32
    %6 = vector.broadcast %cst_5 : f32 to vector<8x32xf32>
    %7 = arith.maximumf %5, %6 : vector<8x32xf32>
    %8 = arith.truncf %7 : vector<8x32xf32> to vector<8x32xbf16>
    %c0_6 = arith.constant 0 : index
    %c0_7 = arith.constant 0 : index
    %9 = vector.load %arg4[%c0_6, %c0_7] : memref<32x32xbf16, #tpu.memory_space<vmem>>, vector<32x32xbf16>
    %cst_8 = arith.constant dense<0.000000e+00> : vector<8x32xf32>
    %10 = tpu.matmul %8, %9, %cst_8 {dimension_numbers = #tpu.dot_dimension_numbers<[1], [0], [0], [1], [0, 0, 1, 1], [], []>} : vector<8x32xbf16>, vector<32x32xbf16>, vector<8x32xf32> -> vector<8x32xf32>
    %c0_9 = arith.constant 0 : index
    %c0_10 = arith.constant 0 : index
    %11 = vector.load %arg5[%c0_9, %c0_10] : memref<1x32xf32, #tpu.memory_space<vmem>>, vector<1x32xf32>
    %12 = vector.broadcast %11 : vector<1x32xf32> to vector<8x32xf32>
    %13 = arith.addf %10, %12 : vector<8x32xf32>
    %cst_11 = arith.constant 0.000000e+00 : f32
    %14 = vector.broadcast %cst_11 : f32 to vector<8x32xf32>
    %15 = arith.maximumf %13, %14 : vector<8x32xf32>
    %16 = arith.truncf %15 : vector<8x32xf32> to vector<8x32xbf16>
    %c0_12 = arith.constant 0 : index
    %c0_13 = arith.constant 0 : index
    %17 = vector.load %arg6[%c0_12, %c0_13] : memref<32x32xbf16, #tpu.memory_space<vmem>>, vector<32x32xbf16>
    %cst_14 = arith.constant dense<0.000000e+00> : vector<8x32xf32>
    %18 = tpu.matmul %16, %17, %cst_14 {dimension_numbers = #tpu.dot_dimension_numbers<[1], [0], [0], [1], [0, 0, 1, 1], [], []>} : vector<8x32xbf16>, vector<32x32xbf16>, vector<8x32xf32> -> vector<8x32xf32>
    %c0_15 = arith.constant 0 : index
    %c0_16 = arith.constant 0 : index
    %19 = vector.load %arg7[%c0_15, %c0_16] : memref<1x32xf32, #tpu.memory_space<vmem>>, vector<1x32xf32>
    %20 = vector.broadcast %19 : vector<1x32xf32> to vector<8x32xf32>
    %21 = arith.addf %18, %20 : vector<8x32xf32>
    %cst_17 = arith.constant 0.000000e+00 : f32
    %22 = vector.broadcast %cst_17 : f32 to vector<8x32xf32>
    %23 = arith.maximumf %21, %22 : vector<8x32xf32>
    %24 = arith.truncf %23 : vector<8x32xf32> to vector<8x32xbf16>
    %c0_18 = arith.constant 0 : index
    %c0_19 = arith.constant 0 : index
    %25 = vector.load %arg8[%c0_18, %c0_19] : memref<32x128xbf16, #tpu.memory_space<vmem>>, vector<32x128xbf16>
    %cst_20 = arith.constant dense<0.000000e+00> : vector<8x128xf32>
    %26 = tpu.matmul %24, %25, %cst_20 {dimension_numbers = #tpu.dot_dimension_numbers<[1], [0], [0], [1], [0, 0, 1, 1], [], []>} : vector<8x32xbf16>, vector<32x128xbf16>, vector<8x128xf32> -> vector<8x128xf32>
    %c0_21 = arith.constant 0 : index
    %c0_22 = arith.constant 0 : index
    %27 = vector.load %arg9[%c0_21, %c0_22] : memref<1x128xf32, #tpu.memory_space<vmem>>, vector<1x128xf32>
    %28 = vector.broadcast %27 : vector<1x128xf32> to vector<8x128xf32>
    %29 = arith.addf %26, %28 : vector<8x128xf32>
    %30 = arith.truncf %29 : vector<8x128xf32> to vector<8x128xbf16>
    %c0_23 = arith.constant 0 : index
    %c0_24 = arith.constant 0 : index
    %31 = vector.load %arg10[%c0_23, %c0_24] : memref<8x128xbf16, #tpu.memory_space<vmem>>, vector<8x128xbf16>
    tpu.vector_store %arg10[%c0_23, %c0_24], %30 {strides = array<i32>} : memref<8x128xbf16, #tpu.memory_space<vmem>>, vector<8x128xbf16>,
    return
  }
  func.func @transform_0(%arg0: i32) -> (i32, i32) {
    %c0_i32 = arith.constant 0 : i32
    %c0_i32_0 = arith.constant 0 : i32
    return %arg0, %c0_i32 : i32, i32
  }
  func.func @transform_1(%arg0: i32) -> (i32, i32) {
    %c0_i32 = arith.constant 0 : i32
    %c0_i32_0 = arith.constant 0 : i32
    %c0_i32_1 = arith.constant 0 : i32
    return %c0_i32, %c0_i32_0 : i32, i32
  }
  func.func @transform_2(%arg0: i32) -> (i32, i32) {
    %c0_i32 = arith.constant 0 : i32
    %c0_i32_0 = arith.constant 0 : i32
    %c0_i32_1 = arith.constant 0 : i32
    return %c0_i32, %c0_i32_0 : i32, i32
  }
  func.func @transform_3(%arg0: i32) -> (i32, i32) {
    %c0_i32 = arith.constant 0 : i32
    %c0_i32_0 = arith.constant 0 : i32
    %c0_i32_1 = arith.constant 0 : i32
    return %c0_i32, %c0_i32_0 : i32, i32
  }
  func.func @transform_4(%arg0: i32) -> (i32, i32) {
    %c0_i32 = arith.constant 0 : i32
    %c0_i32_0 = arith.constant 0 : i32
    %c0_i32_1 = arith.constant 0 : i32
    return %c0_i32, %c0_i32_0 : i32, i32
  }
  func.func @transform_5(%arg0: i32) -> (i32, i32) {
    %c0_i32 = arith.constant 0 : i32
    %c0_i32_0 = arith.constant 0 : i32
    %c0_i32_1 = arith.constant 0 : i32
    return %c0_i32, %c0_i32_0 : i32, i32
  }
  func.func @transform_6(%arg0: i32) -> (i32, i32) {
    %c0_i32 = arith.constant 0 : i32
    %c0_i32_0 = arith.constant 0 : i32
    %c0_i32_1 = arith.constant 0 : i32
    return %c0_i32, %c0_i32_0 : i32, i32
  }
  func.func @transform_7(%arg0: i32) -> (i32, i32) {
    %c0_i32 = arith.constant 0 : i32
    %c0_i32_0 = arith.constant 0 : i32
    %c0_i32_1 = arith.constant 0 : i32
    return %c0_i32, %c0_i32_0 : i32, i32
  }
  func.func @transform_8(%arg0: i32) -> (i32, i32) {
    %c0_i32 = arith.constant 0 : i32
    %c0_i32_0 = arith.constant 0 : i32
    %c0_i32_1 = arith.constant 0 : i32
    return %c0_i32, %c0_i32_0 : i32, i32
  }
  func.func @transform_9(%arg0: i32) -> (i32, i32) {
    %c0_i32 = arith.constant 0 : i32
    %c0_i32_0 = arith.constant 0 : i32
    return %arg0, %c0_i32 : i32, i32
  }
}

</mosaic_0001>

<bundles_post_ra>
// kernel: net_forward.1
= control target key start
LH: loop header
LB: loop body
LE: loop exit
PB: predicated region body
PF: predicated region fallthrough
CT: control target
= control target key end

     0   :  { %14 = vsyncpa [#allocation3], 0  ;;  %s680_s0 = inlined_call_operand.vmem [shape: bf16[8,32], index: 0, kind: input, shape index: {}]   ;;  %s681_s1 = inlined_call_operand.hbm [shape: bf16[32,32], index: 1, kind: input, shape index: {}]   ;;  %s682_s2 = inlined_call_operand.vmem [shape: f32[1,32], index: 2, kind: input, shape index: {}]   ;;  %s683_s3 = inlined_call_operand.vmem [shape: bf16[32,32], index: 3, kind: input, shape index: {}]   ;;  %s684_s4 = inlined_call_operand.vmem [shape: f32[1,32], index: 4, kind: input, shape index: {}]   ;;  %s685_s5 = inlined_call_operand.hbm [shape: bf16[32,32], index: 5, kind: input, shape index: {}]   ;;  %s686_s6 = inlined_call_operand.hbm [shape: f32[1,32], index: 6, kind: input, shape index: {}]   ;;  %s687_s7 = inlined_call_operand.vmem [shape: bf16[32,128], index: 7, kind: input, shape index: {}]   ;;  %s688_s8 = inlined_call_operand.hbm [shape: f32[1,128], index: 8, kind: input, shape index: {}]   ;;  %s689_s9 = inlined_call_operand.vmem [shape: bf16[8,128], index: 9, kind: output, shape index: {}]  }
   0x1   :  { %15 = vsyncpa [#allocation5], 0 }
   0x2   :  { %16 = vsyncpa [#allocation8], 0  ;;  %s535_s30 = smov [#allocation4]   ;;  %s536_s11 = smov [#allocation2]  }
   0x3   :  { %s42_s10 = sshll.u32 %s535_s30, 4  ;;  %s24_s12 = sshll.u32 %s536_s11, 4  ;;  %s43_s10 = int_to_ptr.vmem [resolvable:$true] %s42_s10  ;;  %s593_s12 = int_to_ptr.vmem [resolvable:$true] %s24_s12 }
   0x4   :  { %s441_s15 = scalar_lea.hbm %s685_s5, 256 }
   0x5   :  { %p442_p0 = scmp.ne.s32.totalorder %s685_s5, %s441_s15  ;;  %p445_p1 = scmp.lt.u32.totalorder %s441_s15, %s685_s5 }
   0x7   :  { %p447_p2 = pnand %p445_p1, %p442_p0 }
   0x9   :  { %450 = shalt.err (!%p447_p2)
}
   0xa   :  { %s451_s20 = scalar_lea.vmem %s43_s10, 256  ;;  %p456_p4 = scmp.lt.s32.totalorder %s43_s10, %s43_s10 }
   0xb   :  { %p452_p3 = scmp.ne.s32.totalorder %s43_s10, %s451_s20  ;;  %p457_p5 = scmp.lt.s32.totalorder %s451_s20, %s451_s20 }
   0xd   :  { %p458_p6 = por %p457_p5, %p456_p4 }
   0xf   :  { %p459_p7 = pnand %p458_p6, %p452_p3 }
  0x11   :  { %462 = shalt.err (!%p459_p7)
}
  0x12   :  { %s537_s21 = smov 64   ;;  %s538_s22 = smov 4  }
  0x13   :  { %48 = dma.hbm_to_vmem [thread:$0]  %s685_s5, 256, %s43_s10, [#allocation5], %s537_s21, %s537_s21, %s538_s22  }
  0x14   :  { %s463_s27 = scalar_lea.hbm %s681_s1, 256 }
  0x15   :  { %p464_p8 = scmp.ne.s32.totalorder %s681_s1, %s463_s27  ;;  %p467_p9 = scmp.lt.u32.totalorder %s463_s27, %s681_s1 }
  0x17   :  { %p469_p10 = pnand %p467_p9, %p464_p8 }
  0x19   :  { %472 = shalt.err (!%p469_p10)
}
  0x1a   :  { %s473_s13 = scalar_lea.vmem %s593_s12, 256  ;;  %p478_p12 = scmp.lt.s32.totalorder %s593_s12, %s593_s12 }
  0x1b   :  { %p474_p11 = scmp.ne.s32.totalorder %s593_s12, %s473_s13  ;;  %p479_p13 = scmp.lt.s32.totalorder %s473_s13, %s473_s13 }
  0x1d   :  { %p480_p0 = por %p479_p13, %p478_p12 }
  0x1f   :  { %p481_p1 = pnand %p480_p0, %p474_p11 }
  0x21   :  { %484 = shalt.err (!%p481_p1)
}
  0x22   :  { %30 = dma.hbm_to_vmem [thread:$0]  %s681_s1, 256, %s593_s12, [#allocation3], %s537_s21, %s537_s21, %s538_s22  }
  0x23   :  { %s539_s14 = smov [#allocation6]   ;;  %s540_s16 = smov [#allocation7]  }
  0x24   :  { %s55_s15 = sshll.u32 %s539_s14, 4  ;;  %s67_s17 = sshll.u32 %s540_s16, 4  ;;  %s56_s15 = int_to_ptr.vmem [resolvable:$true] %s55_s15  ;;  %s68_s17 = int_to_ptr.vmem [resolvable:$true] %s67_s17 }
  0x25   :  { %s485_s20 = scalar_lea.hbm %s686_s6, 16 }
  0x26   :  { %p486_p2 = scmp.ne.s32.totalorder %s686_s6, %s485_s20  ;;  %p489_p3 = scmp.lt.u32.totalorder %s485_s20, %s686_s6 }
  0x28   :  { %p491_p4 = pnand %p489_p3, %p486_p2 }
  0x2a   :  { %494 = shalt.err (!%p491_p4)
}
  0x2b   :  { %s495_s1 = scalar_lea.vmem %s56_s15, 16  ;;  %s499_s12 = scalar_lea.vmem %s56_s15, 32 }
  0x2c   :  { %p496_p5 = scmp.ne.s32.totalorder %s56_s15, %s495_s1  ;;  %p500_p6 = scmp.lt.s32.totalorder %s56_s15, %s56_s15 }
  0x2d   :  { %p501_p7 = scmp.lt.s32.totalorder %s499_s12, %s495_s1 }
  0x2f   :  { %p502_p8 = por %p501_p7, %p500_p6 }
  0x31   :  { %p503_p9 = pnand %p502_p8, %p496_p5 }
  0x33   :  { %506 = shalt.err (!%p503_p9)
}
  0x34   :  { %58 = dma.hbm_to_vmem [thread:$0]  %s686_s6, 16, %s56_s15, [#allocation5]  }
  0x35   :  { %s507_s29 = scalar_lea.hbm %s688_s8, 16 }
  0x36   :  { %p508_p10 = scmp.ne.s32.totalorder %s688_s8, %s507_s29  ;;  %p511_p11 = scmp.lt.u32.totalorder %s507_s29, %s688_s8 }
  0x38   :  { %p513_p12 = pnand %p511_p11, %p508_p10 }
  0x3a   :  { %516 = shalt.err (!%p513_p12)
}
  0x3b   :  { %s517_s10 = scalar_lea.vmem %s68_s17, 16  ;;  %s521_s14 = scalar_lea.vmem %s68_s17, 32 }
  0x3c   :  { %p518_p13 = scmp.ne.s32.totalorder %s68_s17, %s517_s10  ;;  %p522_p0 = scmp.lt.s32.totalorder %s68_s17, %s68_s17 }
  0x3d   :  { %p523_p1 = scmp.lt.s32.totalorder %s521_s14, %s517_s10 }
  0x3f   :  { %p524_p2 = por %p523_p1, %p522_p0 }
  0x41   :  { %p525_p3 = pnand %p524_p2, %p518_p13 }
  0x43   :  { %528 = shalt.err (!%p525_p3)
}
  0x44   :  { %70 = dma.hbm_to_vmem [thread:$0]  %s688_s8, 16, %s68_s17, [#allocation8]  }
  0x45   :  { %529 = dma.done.wait [#allocation3], 256  }
  0x46   :  { %530 = vsyncadd [#allocation3], 4294967040 }
  0x47   :  { %531 = dma.done.wait [#allocation5], 272  }
  0x48   :  { %532 = vsyncadd [#allocation5], 4294967024 }
  0x49   :  { %533 = dma.done.wait [#allocation8], 16  }
  0x4a   :  { %534 = vsyncadd [#allocation8], 4294967280  ;;  %v541_v0 = vmov 0.0   ;;  %vm542_vm0 = vmmov 0   ;;  %v433_v1 = vld [vmem:[#allocation2] sm:$0xff]   ;;  %v434_v2 = vld [vmem:[#allocation2 + $0x8] sm:$0xff]  }
  0x4b   :  { %393 = vmatprep.subr.bf16.mxu0 %v541_v0  ;;  %397 = vmatprep.mubr.msk.bf16.mxu0 %vm542_vm0, %v541_v0  ;;  %vm108_vm1 = vcmask 261120   ;;  %v84_v3 = vld [vmem:[%s680_s0] sm:$0xf]  ;;  %v436_v5 = vld [vmem:[%s683_s3 + $0x8] sm:$0xff]   ;;  %v437_v6 = vld [vmem:[#allocation4] sm:$0xff]  }
  0x4c   :  { %401 = vmatprep.subr.bf16.mxu1 %v541_v0  ;;  %405 = vmatprep.mubr.msk.bf16.mxu1 %vm542_vm0, %v541_v0  ;;  %v435_v4 = vld [vmem:[%s683_s3] sm:$0xff]   ;;  %v438_v15 = vld [vmem:[#allocation4 + $0x8] sm:$0xff]   ;;  %v440_v25 = vld [vmem:[%s687_s7 + $0x8] sm:$0xff]  }
  0x4d   :  { %394 = vmatpush3.bf16.msra.mxu0 %v433_v1  ;;  %402 = vmatpush3.bf16.msra.mxu1 %v435_v4  ;;  %v365_v7 = vld [vmem:[%s682_s2] ss:$0 sm:$0xff]  ;;  %v377_v34 = vld [vmem:[#allocation7] ss:$0 sm:$0xff] }
  0x4e   :  { %395 = vmatprep.subr.bf16.mxu0 %v541_v0  ;;  %403 = vmatprep.subr.bf16.mxu1 %v541_v0  ;;  %v439_v16 = vld [vmem:[%s687_s7] sm:$0xff]  }
  0x4f   :  { %v369_v17 = vld [vmem:[%s684_s4] ss:$0 sm:$0xff] }
  0x50   :  { %v373_v26 = vld [vmem:[#allocation6] ss:$0 sm:$0xff] }
  0x51   :  { %396 = vmatpush3.bf16.msra.mxu0 %v434_v2  ;;  %404 = vmatpush3.bf16.msra.mxu1 %v436_v5 }
  0x52   :  { %409 = vmatprep.subr.bf16.mxu0 %v541_v0  ;;  %417 = vmatprep.subr.bf16.mxu1 %v541_v0 }
  0x54   :  { %398 = vmatmul.mubr.msk.bf16.vlgmr.msra.gmra.mrb[0].mxu0 %vm108_vm1, %v84_v3 }
  0x55   :  { %413 = vmatprep.mubr.msk.bf16.mxu0 %vm542_vm0, %v541_v0  ;;  %410 = vmatpush3.bf16.msra.mxu0 %v437_v6 }
  0x56   :  { %411 = vmatprep.subr.bf16.mxu0 %v541_v0 }
  0x59   :  { %412 = vmatpush3.bf16.msra.mxu0 %v438_v15 }
 0x127   :  { %v146_v8 = vpop.f32.mrb[0].mxu0 }
 0x128   :  { %v147_v9 = vadd.f32 %v365_v7, %v146_v8  ;;  %v399_v10 = vpop.f32.mrb[1].mxu0 }
 0x129   :  { %v149_v11 = vpop.f32.mrb[2].mxu0 }
 0x12a   :  { %v152_v12 = vmax.f32 %v147_v9, 0.0  ;;  %v400_v13 = vpop.f32.mrb[3].mxu0 }
 0x12c   :  { %v153_v14 = vpack.c.bf16 %v152_v12, %v152_v12 }
 0x12e   :  { %406 = vmatmul.mubr.msk.bf16.vlgmr.msra.gmra.mrb[0].mxu1 %vm108_vm1, %v153_v14 }
 0x12f   :  { %421 = vmatprep.mubr.msk.bf16.mxu1 %vm542_vm0, %v541_v0  ;;  %418 = vmatpush3.bf16.msra.mxu1 %v439_v16 }
 0x130   :  { %419 = vmatprep.subr.bf16.mxu1 %v541_v0 }
 0x133   :  { %420 = vmatpush3.bf16.msra.mxu1 %v440_v25 }
 0x201   :  { %v214_v18 = vpop.f32.mrb[0].mxu1 }
 0x202   :  { %v215_v19 = vadd.f32 %v369_v17, %v214_v18  ;;  %v407_v20 = vpop.f32.mrb[1].mxu1 }
 0x203   :  { %v217_v21 = vpop.f32.mrb[2].mxu1 }
 0x204   :  { %v220_v22 = vmax.f32 %v215_v19, 0.0  ;;  %v408_v23 = vpop.f32.mrb[3].mxu1 }
 0x206   :  { %v221_v24 = vpack.c.bf16 %v220_v22, %v220_v22 }
 0x208   :  { %414 = vmatmul.mubr.msk.bf16.vlgmr.msra.gmra.mrb[4].mxu0 %vm108_vm1, %v221_v24 }
 0x2db   :  { %v282_v27 = vpop.f32.mrb[4].mxu0 }
 0x2dc   :  { %v283_v28 = vadd.f32 %v373_v26, %v282_v27  ;;  %v415_v29 = vpop.f32.mrb[5].mxu0 }
 0x2dd   :  { %v285_v30 = vpop.f32.mrb[6].mxu0 }
 0x2de   :  { %v288_v31 = vmax.f32 %v283_v28, 0.0  ;;  %v416_v32 = vpop.f32.mrb[7].mxu0 }
 0x2e0   :  { %v289_v33 = vpack.c.bf16 %v288_v31, %v288_v31 }
 0x2e2   :  { %422 = vmatmul.mubr.msk.bf16.vlgmr.msra.gmra.mrb[4].mxu1 %vm108_vm1, %v289_v33 }
 0x3b5   :  { %v350_v35 = vpop.f32.mrb[4].mxu1 }
 0x3b6   :  { %v351_v36 = vadd.f32 %v377_v34, %v350_v35  ;;  %v423_v37 = vpop.f32.mrb[5].mxu1 }
 0x3b7   :  { %v353_v38 = vpop.f32.mrb[6].mxu1 }
 0x3b8   :  { %v356_v39 = vpack.c.bf16 %v351_v36, %v351_v36  ;;  %v424_v40 = vpop.f32.mrb[7].mxu1 }
 0x3ba   :  { %357 = vst [vmem:[%s689_s9] sm:$0xf] %v356_v39 }
 0x3bb   :  { %362 = vsyncpa [#allocation3], 1 }
 0x3bc   :  { %363 = vsyncpa [#allocation5], 1 }
 0x3bd   :  { %364 = vsyncpa [#allocation8], 1 }

</bundles_post_ra>
